<compile_context>
chip_gen: v7x
topology: tpu7x:2x2x1
jax: 0.10.0
libtpu: 0.0.40
codegen_flags: <defaults>
</compile_context>

<pallas_src>
import functools

import jax
import jax.numpy as jnp
from jax.experimental import pallas as pl
from jax.experimental.pallas import tpu as pltpu

_LANE = 128
_SUBLANE = 8
_NEG = -1.0e30  # column-pad value: exp(_NEG - m) underflows to exactly 0.0


def _round_up(x, m):
    return (x + m - 1) // m * m


def _vmem_limit_bytes(tn, vp):
    """Rough double-buffered VMEM need: table + logits tile + token tile."""
    table = 2 * vp * vp * 4
    logits = 2 * tn * vp * 4
    tok = 2 * tn * _LANE * 4          # (tn, <=2) i32 pads to 128 lanes
    need = table + logits + tok + (2 << 20)
    return max(32 << 20, min(need, 96 << 20))


def _logits_kernel(idx_ref, emb_ref, logits_ref):
    """Inference path: embedding gather as one-hot @ table on the MXU."""
    tn = idx_ref.shape[0]
    vp = emb_ref.shape[0]
    idx = idx_ref[...]                                            # (TN, 1) i32
    col = jax.lax.broadcasted_iota(jnp.int32, (tn, vp), 1)        # (TN, Vp)
    onehot = (col == idx).astype(emb_ref.dtype)
    logits_ref[...] = jnp.dot(onehot, emb_ref[...],
                              preferred_element_type=jnp.float32)


def _logits_loss_kernel(tok_ref, emb_ref, logits_ref, loss_ref, *, n_valid):
    """Training path: gather + fused numerically-stable CE partial sum.

    tok_ref   : (TN, 2) i32 VMEM tile; column 0 = idx, column 1 = targets.
    emb_ref   : (Vp, Vp) f32, resident across the grid (constant index_map).
    logits_ref: (TN, Vp) f32 lane-dense output tile.
    loss_ref  : (1, 1) f32 SMEM per-tile partial CE sum.
    n_valid   : static true N (= B*T) for padded-row masking.
    """
    i = pl.program_id(0)
    tn = tok_ref.shape[0]
    vp = emb_ref.shape[0]

    tok = tok_ref[...]                                            # (TN, 2)
    idx = tok[:, 0:1]                                             # (TN, 1)
    tgt = tok[:, 1:2]                                             # (TN, 1)
    col = jax.lax.broadcasted_iota(jnp.int32, (tn, vp), 1)        # (TN, Vp)

    onehot = (col == idx).astype(emb_ref.dtype)
    logits = jnp.dot(onehot, emb_ref[...],
                     preferred_element_type=jnp.float32)          # (TN, Vp)
    logits_ref[...] = logits

    # Numerically-stable logsumexp; padded columns hold -1e30 -> exp == 0.
    m = jnp.max(logits, axis=-1, keepdims=True)                   # (TN, 1)
    lse = m + jnp.log(jnp.sum(jnp.exp(logits - m), axis=-1, keepdims=True))

    # Target logit via select (no second float one-hot / extra multiply).
    tgt_logit = jnp.sum(jnp.where(col == tgt, logits, 0.0),
                        axis=-1, keepdims=True)                   # (TN, 1)
    per_row = lse - tgt_logit                                     # (TN, 1)

    if n_valid % tn != 0:
        # Padded rows exist only in this case (static check at trace time).
        row = i * tn + jax.lax.broadcasted_iota(jnp.int32, (tn, 1), 0)
        per_row = jnp.where(row < n_valid, per_row, 0.0)

    loss_ref[0, 0] = jnp.sum(per_row)


def _pad_table(emb, vp):
    """Class (column) pad -> -1e30 (vanishes from logsumexp); token-id (row /
    matmul-K) pad -> 0 (never selected by the one-hot). No-op when vp == V."""
    v = emb.shape[0]
    emb_f32 = emb.astype(jnp.float32)
    if vp == v:
        return emb_f32
    emb_cols = jnp.pad(emb_f32, ((0, 0), (0, vp - v)), constant_values=_NEG)
    return jnp.pad(emb_cols, ((0, vp - v), (0, 0)), constant_values=0.0)


def _choose_tiles(n, tile_n):
    tn = min(tile_n, _round_up(n, _SUBLANE))
    tn = _round_up(tn, _SUBLANE)
    n_pad = _round_up(n, tn)
    return tn, n_pad


@functools.partial(jax.jit, static_argnames=("tile_n",))
def _forward_infer(emb, idx, *, tile_n=1024):
    B, T = idx.shape
    V = emb.shape[0]
    N = B * T

    vp = _round_up(max(V, 1), _LANE)
    tn, n_pad = _choose_tiles(N, tile_n)
    num_tiles = n_pad // tn

    emb_pad = _pad_table(emb, vp)
    idx_flat = idx.reshape(N).astype(jnp.int32)
    if n_pad != N:
        idx_flat = jnp.pad(idx_flat, (0, n_pad - N))
    idx_col = idx_flat.reshape(n_pad, 1)

    logits_pad = pl.pallas_call(
        _logits_kernel,
        out_shape=jax.ShapeDtypeStruct((n_pad, vp), jnp.float32),
        grid=(num_tiles,),
        in_specs=[
            pl.BlockSpec((tn, 1), lambda i: (i, 0)),         # idx tile
            pl.BlockSpec((vp, vp), lambda i: (0, 0)),        # table resident
        ],
        out_specs=pl.BlockSpec((tn, vp), lambda i: (i, 0)),  # lane-dense logits
        compiler_params=pltpu.CompilerParams(
            dimension_semantics=("parallel",),
            vmem_limit_bytes=_vmem_limit_bytes(tn, vp)),
    )(idx_col, emb_pad)

    # Identity slice (no padding) is eliminated by XLA; otherwise it fuses with
    # the reshape inside this single jitted program.
    return logits_pad[:N, :V].reshape(B, T, V)


@functools.partial(jax.jit, static_argnames=("tile_n",))
def _forward_train(emb, idx, targets, *, tile_n=1024):
    B, T = idx.shape
    V = emb.shape[0]
    N = B * T

    vp = _round_up(max(V, 1), _LANE)
    tn, n_pad = _choose_tiles(N, tile_n)
    num_tiles = n_pad // tn

    emb_pad = _pad_table(emb, vp)
    # Pack idx/targets into one (N, 2) i32 array: single DMA stream per tile.
    tok = jnp.stack([idx.reshape(N).astype(jnp.int32),
                     targets.reshape(N).astype(jnp.int32)], axis=-1)
    if n_pad != N:
        tok = jnp.pad(tok, ((0, n_pad - N), (0, 0)))

    kernel = functools.partial(_logits_loss_kernel, n_valid=N)

    logits_pad, partials = pl.pallas_call(
        kernel,
        out_shape=[
            jax.ShapeDtypeStruct((n_pad, vp), jnp.float32),        # logits
            jax.ShapeDtypeStruct((num_tiles, 1), jnp.float32),     # partial CE
        ],
        grid=(num_tiles,),
        in_specs=[
            pl.BlockSpec((tn, 2), lambda i: (i, 0)),               # idx+tgt tile
            pl.BlockSpec((vp, vp), lambda i: (0, 0)),              # table resident
        ],
        out_specs=[
            pl.BlockSpec((tn, vp), lambda i: (i, 0)),              # lane-dense logits
            pl.BlockSpec((1, 1), lambda i: (i, 0),
                         memory_space=pltpu.MemorySpace.SMEM),     # scalar partial
        ],
        compiler_params=pltpu.CompilerParams(
            dimension_semantics=("parallel",),
            vmem_limit_bytes=_vmem_limit_bytes(tn, vp)),
    )(tok, emb_pad)

    loss = jnp.sum(partials) / N                 # mean over the true N rows
    return logits_pad[:N, :V], loss


def bigram_forward(emb, idx, targets=None, *, tile_n=1024):
    """Mirrors BigramLanguageModel.forward.

    emb:     (V, V) float32 embedding table (nn.Embedding weight).
    idx:     (B, T) int32 token ids.
    targets: optional (B, T) int32.
    tile_n:  rows of B*T per grid step (1024 default; try 2048 on v7x).
    Returns (logits, loss):
      targets is None  -> logits (B, T, V), loss None
      targets given    -> logits (B*T, V),  loss scalar ()
    """
    if targets is None:
        return _forward_infer(emb, idx, tile_n=tile_n), None
    return _forward_train(emb, idx, targets, tile_n=tile_n)


if __name__ == "__main__":
    # Original module derives vocab_size from `text` (empty); use a small
    # synthetic vocab instead.
    vocab_size = 32
    B, T = 2, 8

    key = jax.random.PRNGKey(0)
    k_emb, k_idx, k_tgt = jax.random.split(key, 3)

    emb = jax.random.normal(k_emb, (vocab_size, vocab_size), dtype=jnp.float32)
    idx = jax.random.randint(k_idx, (B, T), 0, vocab_size, dtype=jnp.int32)
    targets = jax.random.randint(k_tgt, (B, T), 0, vocab_size, dtype=jnp.int32)

    # Training path (logits + loss).
    logits, loss = bigram_forward(emb, idx, targets)
    jax.block_until_ready((logits, loss))

    # Pure-JAX reference check.
    ref_logits = emb[idx.reshape(-1)]                               # (B*T, V)
    ref_lse = jax.nn.logsumexp(ref_logits, axis=-1)
    ref_tgt = ref_logits[jnp.arange(B * T), targets.reshape(-1)]
    ref_loss = jnp.mean(ref_lse - ref_tgt)
    assert logits.shape == (B * T, vocab_size)
    assert jnp.allclose(logits, ref_logits, atol=1e-5), "logits mismatch"
    assert jnp.allclose(loss, ref_loss, atol=1e-5), "loss mismatch"

    # Inference path (targets=None): no CE computed at all.
    logits_inf, loss_inf = bigram_forward(emb, idx, None)
    jax.block_until_ready(logits_inf)
    assert logits_inf.shape == (B, T, vocab_size)
    assert loss_inf is None
    assert jnp.allclose(logits_inf.reshape(B * T, vocab_size), ref_logits,
                        atol=1e-5)

    # TODO(synk): generate() (torch.multinomial autoregressive sampling loop)
    # is a host-side loop over forward() and is not part of this kernel.
    print("KERNEL_OK")
</pallas_src>

<mosaic_0001>
module attributes {stable_mosaic.version = 11 : i64} {
  func.func @_logits_loss_kernel(%arg0: i32, %arg1: memref<16x2xi32, #tpu.memory_space<vmem>>, %arg2: memref<128x128xf32, #tpu.memory_space<vmem>>, %arg3: memref<16x128xf32, #tpu.memory_space<vmem>>, %arg4: memref<1x1xf32, #tpu.memory_space<smem>>) attributes {dimension_semantics = [#tpu.dimension_semantics<parallel>], iteration_bounds = array<i64: 1>, scalar_prefetch = 0 : i64, scratch_operands = 0 : i64, tpu.core_type = #tpu.core_type<tc>, window_params = [{transform_indices = @transform_0, window_bounds = array<i64: 16, 2>}, {pipeline_mode = #tpu.pipeline_mode<synchronous>, transform_indices = @transform_1, window_bounds = array<i64: 128, 128>}, {transform_indices = @transform_2, window_bounds = array<i64: 16, 128>}, {transform_indices = @transform_3, window_bounds = array<i64: 1, 1>}]} {
    %c0 = arith.constant 0 : index
    %c0_0 = arith.constant 0 : index
    %0 = vector.load %arg1[%c0, %c0_0] : memref<16x2xi32, #tpu.memory_space<vmem>>, vector<16x2xi32>
    %1 = vector.extract_strided_slice %0 {offsets = [0, 0], sizes = [16, 1], strides = [1, 1]} : vector<16x2xi32> to vector<16x1xi32>
    %2 = vector.extract_strided_slice %0 {offsets = [0, 1], sizes = [16, 1], strides = [1, 1]} : vector<16x2xi32> to vector<16x1xi32>
    %3 = tpu.iota {dimensions = array<i32: 1>} : vector<16x128xi32>
    %4 = vector.broadcast %1 : vector<16x1xi32> to vector<16x128xi32>
    %5 = arith.cmpi eq, %3, %4 : vector<16x128xi32>
    %6 = arith.extui %5 : vector<16x128xi1> to vector<16x128xi32>
    %7 = arith.sitofp %6 : vector<16x128xi32> to vector<16x128xf32>
    %c0_1 = arith.constant 0 : index
    %c0_2 = arith.constant 0 : index
    %8 = vector.load %arg2[%c0_1, %c0_2] : memref<128x128xf32, #tpu.memory_space<vmem>>, vector<128x128xf32>
    %cst = arith.constant dense<0.000000e+00> : vector<16x128xf32>
    %9 = tpu.matmul %7, %8, %cst {dimension_numbers = #tpu.dot_dimension_numbers<[1], [0], [0], [1], [0, 0, 1, 1], [], []>} : vector<16x128xf32>, vector<128x128xf32>, vector<16x128xf32> -> vector<16x128xf32>
    %c0_3 = arith.constant 0 : index
    %c0_4 = arith.constant 0 : index
    %10 = vector.load %arg3[%c0_3, %c0_4] : memref<16x128xf32, #tpu.memory_space<vmem>>, vector<16x128xf32>
    tpu.vector_store %arg3[%c0_3, %c0_4], %9 {strides = array<i32>} : memref<16x128xf32, #tpu.memory_space<vmem>>, vector<16x128xf32>,
    %cst_5 = arith.constant dense<0xFF800000> : vector<16xf32>
    %11 = vector.multi_reduction <maximumf>, %9, %cst_5 [1] : vector<16x128xf32> to vector<16xf32>
    %12 = vector.shape_cast %11 : vector<16xf32> to vector<16x1xf32>
    %13 = vector.broadcast %12 : vector<16x1xf32> to vector<16x128xf32>
    %14 = arith.subf %9, %13 : vector<16x128xf32>
    %15 = math.exp %14 : vector<16x128xf32>
    %cst_6 = arith.constant dense<0.000000e+00> : vector<16xf32>
    %16 = vector.multi_reduction <add>, %15, %cst_6 [1] : vector<16x128xf32> to vector<16xf32>
    %17 = vector.shape_cast %16 : vector<16xf32> to vector<16x1xf32>
    %18 = math.log %17 : vector<16x1xf32>
    %19 = arith.addf %12, %18 : vector<16x1xf32>
    %20 = vector.broadcast %2 : vector<16x1xi32> to vector<16x128xi32>
    %21 = arith.cmpi eq, %3, %20 : vector<16x128xi32>
    %cst_7 = arith.constant 0.000000e+00 : f32
    %22 = vector.broadcast %cst_7 : f32 to vector<16x128xf32>
    %23 = arith.select %21, %9, %22 : vector<16x128xi1>, vector<16x128xf32>
    %cst_8 = arith.constant dense<0.000000e+00> : vector<16xf32>
    %24 = vector.multi_reduction <add>, %23, %cst_8 [1] : vector<16x128xf32> to vector<16xf32>
    %25 = vector.shape_cast %24 : vector<16xf32> to vector<16x1xf32>
    %26 = arith.subf %19, %25 : vector<16x1xf32>
    %27 = vector.shape_cast %26 : vector<16x1xf32> to vector<1x16x1xf32>
    %cst_9 = arith.constant dense<0.000000e+00> : vector<1xf32>
    %28 = vector.multi_reduction <add>, %27, %cst_9 [1, 2] : vector<1x16x1xf32> to vector<1xf32>
    %29 = vector.shape_cast %28 : vector<1xf32> to vector<1x1x1xf32>
    %30 = vector.extract %29[0, 0, 0] : f32 from vector<1x1x1xf32>
    %c0_10 = arith.constant 0 : index
    %c0_11 = arith.constant 0 : index
    %31 = memref.load %arg4[%c0_10, %c0_11] : memref<1x1xf32, #tpu.memory_space<smem>>
    memref.store %30, %arg4[%c0_10, %c0_11] : memref<1x1xf32, #tpu.memory_space<smem>>
    return
  }
  func.func @transform_0(%arg0: i32) -> (i32, i32) {
    %c0_i32 = arith.constant 0 : i32
    %c0_i32_0 = arith.constant 0 : i32
    return %arg0, %c0_i32 : i32, i32
  }
  func.func @transform_1(%arg0: i32) -> (i32, i32) {
    %c0_i32 = arith.constant 0 : i32
    %c0_i32_0 = arith.constant 0 : i32
    %c0_i32_1 = arith.constant 0 : i32
    return %c0_i32, %c0_i32_0 : i32, i32
  }
  func.func @transform_2(%arg0: i32) -> (i32, i32) {
    %c0_i32 = arith.constant 0 : i32
    %c0_i32_0 = arith.constant 0 : i32
    return %arg0, %c0_i32 : i32, i32
  }
  func.func @transform_3(%arg0: i32) -> (i32, i32) {
    %c0_i32 = arith.constant 0 : i32
    %c0_i32_0 = arith.constant 0 : i32
    return %arg0, %c0_i32 : i32, i32
  }
}

</mosaic_0001>

<bundles_post_ra>
// kernel: _forward_train.1
= control target key start
LH: loop header
LB: loop body
LE: loop exit
PB: predicated region body
PF: predicated region fallthrough
CT: control target
= control target key end

     0   :  { %9 = vsyncpa [#allocation3], 0  ;;  %v349_v2 = vmov 0   ;;  %s454_s0 = inlined_call_operand.vmem [shape: s32[16,2], index: 0, kind: input, shape index: {}]   ;;  %s455_s1 = inlined_call_operand.vmem [shape: f32[128,128], index: 1, kind: input, shape index: {}]   ;;  %s456_s2 = inlined_call_operand.hbm [shape: f32[16,128], index: 2, kind: output, shape index: {0}]   ;;  %s457_s3 = inlined_call_operand.hbm [shape: f32[1,1], index: 3, kind: output, shape index: {1}]  }
   0x1   :  { %v15_v0 = vld [vmem:[%s454_s0] sm:$0xff]  ;;  %302 = vset.pattern.permute.xlu0 %v349_v2  ;;  %v32_v3 = vld [vmem:[%s455_s1 + $0x8] sm:$0xff]  ;;  %v33_v4 = vld [vmem:[%s455_s1 + $0x10] sm:$0xff] }
   0x2   :  { %v31_v1 = vld [vmem:[%s455_s1] sm:$0xff]  ;;  %v34_v5 = vld [vmem:[%s455_s1 + $0x18] sm:$0xff]  ;;  %20 = vperm.xlu0 %302, %v15_v0   ;;  %v16_v8 = vld [vmem:[%s454_s0 + $0x8] sm:$0xff] }
   0x3   :  { %v261_v6 = vpack.c.bf16 %v32_v3, %v31_v1  ;;  %v265_v7 = vpack.c.bf16 %v34_v5, %v33_v4  ;;  %v35_v9 = vld [vmem:[%s455_s1 + $0x20] sm:$0xff]  ;;  %v36_v10 = vld [vmem:[%s455_s1 + $0x28] sm:$0xff] }
   0x4   :  { %v269_v11 = vpack.c.bf16 %v36_v10, %v35_v9 }
   0x5   :  { %262 = vmatprep.subr.bf16.mxu0 %v261_v6 }
   0x6   :  { %264 = vmatpush3.bf16.msra.mxu0 %v261_v6  ;;  %23 = vperm.xlu0 %302, %v16_v8  }
   0x7   :  { %266 = vmatprep.subr.bf16.mxu0 %v265_v7 }
   0x8   :  { %10 = vsyncpa [#allocation4], 0  ;;  %v37_v12 = vld [vmem:[%s455_s1 + $0x30] sm:$0xff]  ;;  %v38_v13 = vld [vmem:[%s455_s1 + $0x38] sm:$0xff]  ;;  %v350_v14 = vmov 1   ;;  %v17_v28 = vlaneseq  ;;  %v351_v31 = vmov 1.0  }
   0x9   :  { %304 = vset.pattern.permute.xlu1 %v350_v14  ;;  %v273_v15 = vpack.c.bf16 %v38_v13, %v37_v12  ;;  %v39_v16 = vld [vmem:[%s455_s1 + $0x40] sm:$0xff]  ;;  %v40_v17 = vld [vmem:[%s455_s1 + $0x48] sm:$0xff]  ;;  %v41_v19 = vld [vmem:[%s455_s1 + $0x50] sm:$0xff]  ;;  %vm160_vm4 = vcmask 7168  }
   0xa   :  { %268 = vmatpush3.bf16.msra.mxu0 %v265_v7  ;;  %303 = vset.pattern.permute.xlu0 %v350_v14  ;;  %v277_v18 = vpack.c.bf16 %v40_v17, %v39_v16  ;;  %v42_v20 = vld [vmem:[%s455_s1 + $0x58] sm:$0xff]  ;;  %v43_v22 = vld [vmem:[%s455_s1 + $0x60] sm:$0xff]  ;;  %v44_v23 = vld [vmem:[%s455_s1 + $0x68] sm:$0xff]  ;;  %v18_v29 = vand.u32 127, %v17_v28 }
   0xb   :  { %270 = vmatprep.subr.bf16.mxu0 %v269_v11  ;;  %145 = vperm.xlu0 %303, %v15_v0   ;;  %v281_v21 = vpack.c.bf16 %v42_v20, %v41_v19  ;;  %v285_v24 = vpack.c.bf16 %v44_v23, %v43_v22  ;;  %v45_v25 = vld [vmem:[%s455_s1 + $0x70] sm:$0xff]  ;;  %v46_v26 = vld [vmem:[%s455_s1 + $0x78] sm:$0xff]  ;;  %s352_s1 = smov [#allocation2]  }
   0xc   :  { %v289_v27 = vpack.c.bf16 %v46_v26, %v45_v25  ;;  %s180_s20 = sshll.u32 %s352_s1, 4  ;;  %s181_s20 = int_to_ptr.vmem [resolvable:$true] %s180_s20 }
   0xd   :  { %s313_s21 = scalar_lea.vmem %s181_s20, 256  ;;  %p318_p1 = scmp.lt.s32.totalorder %s181_s20, %s181_s20 }
   0xe   :  { %272 = vmatpush3.bf16.msra.mxu0 %v269_v11  ;;  %p314_p0 = scmp.ne.s32.totalorder %s181_s20, %s313_s21  ;;  %p319_p2 = scmp.lt.s32.totalorder %s313_s21, %s313_s21 }
   0xf   :  { %274 = vmatprep.subr.bf16.mxu0 %v273_v15 }
  0x10   :  { %p320_p3 = por %p319_p2, %p318_p1 }
  0x12   :  { %276 = vmatpush3.bf16.msra.mxu0 %v273_v15  ;;  %p321_p4 = pnand %p320_p3, %p314_p0 }
  0x13   :  { %278 = vmatprep.subr.bf16.mxu0 %v277_v18 }
  0x16   :  { %280 = vmatpush3.bf16.msra.mxu0 %v277_v18 }
  0x17   :  { %282 = vmatprep.subr.bf16.mxu0 %v281_v21 }
  0x1a   :  { %284 = vmatpush3.bf16.msra.mxu0 %v281_v21 }
  0x1b   :  { %286 = vmatprep.subr.bf16.mxu0 %v285_v24 }
  0x1e   :  { %288 = vmatpush3.bf16.msra.mxu0 %v285_v24 }
  0x1f   :  { %290 = vmatprep.subr.bf16.mxu0 %v289_v27 }
  0x22   :  { %292 = vmatpush3.bf16.msra.mxu0 %v289_v27 }
  0x81   :  { %v21_v30 = vpop.permute.xlu0 %20 }
  0x82   :  { %vm25_vm0 = vcmp.eq.s32.totalorder %v18_v29, %v21_v30 }
  0x83   :  { %258 = vmatprep.mubr.msk.f32.mxu0 %vm25_vm0, %v351_v31 }
  0x85   :  { %v24_v32 = vpop.permute.xlu0 %23 }
  0x86   :  { %vm26_vm1 = vcmp.eq.s32.totalorder %v18_v29, %v24_v32 }
  0x87   :  { %259 = vmatmul.mubr.msk.f32.vlgmr.msra.gmra.mrb[0].mxu0 %vm26_vm1, %v351_v31 }
  0x8a   :  { %v146_v42 = vpop.permute.xlu0 %145 }
  0x8b   :  { %vm150_vm2 = vcmp.eq.s32.totalorder %v18_v29, %v146_v42 }
 0x15a   :  { %v260_v33 = vpop.f32.mrb[0].mxu0 }
 0x15b   :  { %123 = vst [vmem:[#allocation2 + $0x8] sm:$0xff] %v260_v33  ;;  %126 = vmax.xlane.f32.xlu1 %v260_v33  ;;  %v113_v34 = vpop.f32.mrb[1].mxu0 }
 0x15c   :  { %122 = vst [vmem:[#allocation2] sm:$0xff] %v113_v34  ;;  %v152_v45 = vsel %vm150_vm2, %v113_v34, 0.0 }
 0x15f   :  { %124 = vmax.xlane.f32.xlu1 %v113_v34 }
 0x170   :  { %148 = vperm.xlu1 %304, %v16_v8  }
 0x1e8   :  { %v127_v35 = vpop.xlane.xlu1 %126 }
 0x1e9   :  { %v129_v36 = vsub.f32 %v260_v33, %v127_v35 }
 0x1eb   :  { %v132_v37 = vmul.f32 1.442695, %v129_v36 }
 0x1ec   :  { %v125_v38 = vpop.xlane.xlu1 %124 }
 0x1ed   :  { %305 = vpow2.f32 %v132_v37  ;;  %v128_v39 = vsub.f32 %v113_v34, %v125_v38 }
 0x1ef   :  { %v130_v40 = vmul.f32 1.442695, %v128_v39 }
 0x1f0   :  { %v149_v44 = vpop.permute.xlu1 %148 }
 0x1f1   :  { %307 = vpow2.f32 %v130_v40  ;;  %vm151_vm3 = vcmp.eq.s32.totalorder %v18_v29, %v149_v44 }
 0x1f2   :  { %v153_v46 = vsel %vm151_vm3, %v260_v33, 0.0 }
 0x1f7   :  { %v306_v41 = vpop.eup %305 }
 0x1f8   :  { %136 = vadd.xlane.f32.xlu1 %v306_v41 }
 0x1fb   :  { %v308_v43 = vpop.eup %307 }
 0x1fc   :  { %134 = vadd.xlane.f32.xlu0 %v308_v43 }
 0x200   :  { %154 = vadd.xlane.f32.xlu0 %v152_v45 }
 0x204   :  { %156 = vadd.xlane.f32.xlu0 %v153_v46 }
 0x285   :  { %v137_v47 = vpop.xlane.xlu1 %136 }
 0x286   :  { %309 = vlog2.f32 %v137_v47 }
 0x289   :  { %v135_v48 = vpop.xlane.xlu0 %134 }
 0x28a   :  { %311 = vlog2.f32 %v135_v48 }
 0x28d   :  { %v155_v50 = vpop.xlane.xlu0 %154 }
 0x290   :  { %v310_v49 = vpop.eup %309 }
 0x291   :  { %v141_v51 = vmul.f32 0.6931472, %v310_v49  ;;  %v157_v55 = vpop.xlane.xlu0 %156 }
 0x293   :  { %v143_v52 = vadd.f32 %v141_v51, %v127_v35 }
 0x294   :  { %v312_v53 = vpop.eup %311 }
 0x295   :  { %v139_v54 = vmul.f32 0.6931472, %v312_v53  ;;  %v159_v57 = vsub.f32 %v143_v52, %v157_v55 }
 0x297   :  { %v142_v56 = vadd.f32 %v139_v54, %v125_v38  ;;  %v162_v60 = vsel %vm160_vm4, %v159_v57, 0.0 }
 0x299   :  { %v158_v58 = vsub.f32 %v142_v56, %v155_v50 }
 0x29b   :  { %v161_v59 = vsel %vm160_vm4, %v158_v58, 0.0 }
 0x29c   :  { %v163_v61 = vadd.f32 %v162_v60, %v161_v59 }
 0x29e   :  { %164 = vadd.xlane.f32.xlu0 %v163_v61 }
 0x29f   :  { %324 = shalt.err (!%p321_p4)
}
 0x2a0   :  { %s325_s24 = scalar_lea.hbm %s456_s2, 256 }
 0x2a1   :  { %p326_p5 = scmp.ne.s32.totalorder %s456_s2, %s325_s24  ;;  %p329_p6 = scmp.lt.u32.totalorder %s325_s24, %s456_s2 }
 0x2a3   :  { %p331_p7 = pnand %p329_p6, %p326_p5 }
 0x2a5   :  { %334 = shalt.err (!%p331_p7)
}
 0x2a6   :  { %s353_s29 = smov 128   ;;  %s354_s30 = smov 8  }
 0x2a7   :  { %186 = dma.vmem_to_hbm [thread:$0]  %s181_s20, 256, %s456_s2, [#allocation3], %s353_s29, %s353_s29, %s354_s30  }
 0x2a8   :  { %s335_s8 = scalar_lea.hbm %s457_s3, 16 }
 0x2a9   :  { %p336_p8 = scmp.ne.s32.totalorder %s457_s3, %s335_s8  ;;  %p339_p9 = scmp.lt.u32.totalorder %s335_s8, %s457_s3 }
 0x2ab   :  { %p341_p10 = pnand %p339_p9, %p336_p8 }
 0x32b   :  { %v165_v62 = vpop.xlane.xlu0 %164 }
 0x32c   :  { %v166_v63 = vrot.slane %v165_v62, 4 }
 0x32e   :  { %v167_v0 = vadd.f32 %v166_v63, %v165_v62 }
 0x330   :  { %v168_v1 = vrot.slane %v167_v0, 2 }
 0x332   :  { %v169_v2 = vadd.f32 %v168_v1, %v167_v0 }
 0x334   :  { %v170_v3 = vrot.slane %v169_v2, 1 }
 0x336   :  { %v171_v4 = vadd.f32 %v170_v3, %v169_v2 }
 0x338   :  { %293 = vpush %v171_v4 }
 0x369   :  { %s294_s5 = spop %293 }
 0x36a   :  { %174 = sst [smem:[#allocation5]] %s294_s5 }
 0x36b   :  { %344 = shalt.err (!%p341_p10)
}
 0x36c   :  { %s355_s12 = smov [#allocation5]  }
 0x36d   :  { %194 = dma.smem_to_hbm %s355_s12, 16, %s457_s3, [#allocation4]  }
 0x36e   :  { %345 = dma.done.wait [#allocation3], 256  }
 0x36f   :  { %346 = vsyncadd [#allocation3], 4294967040 }
 0x370   :  { %347 = dma.done.wait [#allocation4], 16  }
 0x371   :  { %348 = vsyncadd [#allocation4], 4294967280 }
 0x372   :  { %201 = sfence }
 0x373   :  { %202 = vsyncpa [#allocation3], 1 }
 0x374   :  { %203 = vsyncpa [#allocation4], 1 }

</bundles_post_ra>
